<compile_context>
chip_gen: v7x
topology: tpu7x:2x2x1
jax: 0.10.0
libtpu: 0.0.40
codegen_flags: <defaults>
</compile_context>

<pallas_src>
import jax
import jax.numpy as jnp
from jax.experimental import pallas as pl
from jax.experimental.pallas import tpu as pltpu

HIDDEN = 16
LANES = 128                   # vreg lane width
SUBLANES = 8                  # vreg sublane width
DEFAULT_TILE_ROWS = 4096      # (4096, 128) f32 tile = 2 MiB; ~8 MiB double-buffered
MIN_PALLAS_BATCH = 8192       # below this, a fused jnp expression is faster


def _round_up(x, m):
    return ((x + m - 1) // m) * m


def net_kernel(ac_ref, x_ref, out_ref):
    # ac_ref : (2,)  f32 in SMEM            -> a = ac_ref[0], c = ac_ref[1]
    # x_ref  : (tr, 128) in VMEM (lane-dense batch slab, f32 or bf16)
    # out_ref: (tr, 128) in VMEM (same dtype as input)
    a = ac_ref[0]
    c = ac_ref[1]
    x = x_ref[...].astype(jnp.float32)          # compute in f32 on all chips
    out_ref[...] = jax.nn.sigmoid(x * a + c).astype(out_ref.dtype)


def _fold_params(w1, b1, w2, b2):
    """Fold the two linear layers into scalars (a, c); f32 accumulation."""
    a = jnp.dot(w1, w2, preferred_element_type=jnp.float32).reshape(())
    c = (jnp.dot(b1, w2, preferred_element_type=jnp.float32) + b2).reshape(())
    return a.astype(jnp.float32), c.astype(jnp.float32)


def net_forward(x, w1, b1, w2, b2, *,
                tile_rows=DEFAULT_TILE_ROWS,
                min_pallas_batch=MIN_PALLAS_BATCH):
    """x: (B, 1) float -> (B, 1) float (same dtype).  Exact Net.forward semantics."""
    B = x.shape[0]
    dtype = x.dtype
    a, c = _fold_params(w1, b1, w2, b2)

    # ---- small-batch fast path: XLA fuses this into a single pass ----------
    if B < min_pallas_batch:
        y = jax.nn.sigmoid(x.astype(jnp.float32) * a + c)
        return y.astype(dtype).reshape(B, 1)

    ac = jnp.stack([a, c])                       # (2,) f32 -> SMEM

    # ---- lane-dense (rows, 128) slab; zero-copy when B % 128 == 0 ----------
    rows = max(pl.cdiv(B, LANES), SUBLANES)      # minimal row count
    pad = rows * LANES - B
    xf = x.reshape(-1)
    if pad:
        xf = jnp.pad(xf, (0, pad))               # only for ragged B
    x2 = xf.reshape(rows, LANES)                 # free bitcast when pad == 0

    # Tile: as large as allowed, but always >=2 blocks when rows permit so the
    # second TensorCore on v7x gets work and the DMA pipeline engages.
    tr = min(tile_rows, _round_up(pl.cdiv(rows, 2), SUBLANES))
    tr = max(tr, SUBLANES)
    n_blocks = pl.cdiv(rows, tr)                 # last block may be partial

    out2 = pl.pallas_call(
        net_kernel,
        out_shape=jax.ShapeDtypeStruct((rows, LANES), dtype),
        grid=(n_blocks,),
        in_specs=[
            pl.BlockSpec(memory_space=pltpu.MemorySpace.SMEM),   # folded scalars
            pl.BlockSpec((tr, LANES), lambda i: (i, 0)),         # batch tile
        ],
        out_specs=pl.BlockSpec((tr, LANES), lambda i: (i, 0)),
        compiler_params=pltpu.CompilerParams(
            dimension_semantics=("parallel",),   # batch axis -> both TCs on v7x
            vmem_limit_bytes=32 * 1024 * 1024,   # within v7x scoped default
        ),
    )(ac, x2)

    # back to the module's (B, 1) layout (slice only materializes when ragged)
    out_flat = out2.reshape(-1)
    if pad:
        out_flat = out_flat[:B]
    return out_flat.reshape(B, 1)


def init_params(key):
    """Deterministic parameter init mimicking nn.Linear shapes.

    PyTorch: lin1.weight (16, 1), lin1.bias (16,), lin2.weight (1, 16), lin2.bias (1,)
    Stored here pre-transposed / reshaped for the (B, F) layout.
    """
    k1, k2, k3, k4 = jax.random.split(key, 4)
    bound1 = 1.0 / jnp.sqrt(1.0)
    bound2 = 1.0 / jnp.sqrt(float(HIDDEN))
    w1 = jax.random.uniform(k1, (1, HIDDEN), jnp.float32, -bound1, bound1)
    b1 = jax.random.uniform(k2, (1, HIDDEN), jnp.float32, -bound1, bound1)
    w2 = jax.random.uniform(k3, (HIDDEN, 1), jnp.float32, -bound2, bound2)
    b2 = jax.random.uniform(k4, (1, 1), jnp.float32, -bound2, bound2)
    return w1, b1, w2, b2


def reference_forward(x, w1, b1, w2, b2):
    """Unfused reference: exactly the PyTorch forward (two linears + sigmoid)."""
    h = x.astype(jnp.float32) @ w1 + b1
    y = h @ w2 + b2
    return jax.nn.sigmoid(y)


if __name__ == "__main__":
    key = jax.random.PRNGKey(0)
    kp, kx = jax.random.split(key)
    w1, b1, w2, b2 = init_params(kp)

    # --- 1) Pallas path, B a multiple of 128 (zero-copy repack) -------------
    B = 1024
    x = 100.0 + jax.random.normal(kx, (B, 1), jnp.float32)
    out = jax.block_until_ready(
        net_forward(x, w1, b1, w2, b2, min_pallas_batch=0))
    ref = reference_forward(x, w1, b1, w2, b2)
    assert out.shape == (B, 1)
    assert jnp.allclose(out, ref, atol=1e-5, rtol=1e-5)

    # --- 2) Pallas path, ragged B (partial last block, in-kernel masking) ---
    Br = 1000
    xr = x[:Br]
    out_r = jax.block_until_ready(
        net_forward(xr, w1, b1, w2, b2, min_pallas_batch=0))
    assert out_r.shape == (Br, 1)
    assert jnp.allclose(out_r, ref[:Br], atol=1e-5, rtol=1e-5)

    # --- 3) bf16 I/O path (halves HBM bytes on the bandwidth-bound kernel) --
    xb = x.astype(jnp.bfloat16)
    out_b = jax.block_until_ready(
        net_forward(xb, w1, b1, w2, b2, min_pallas_batch=0))
    assert out_b.dtype == jnp.bfloat16 and out_b.shape == (B, 1)
    assert jnp.allclose(out_b.astype(jnp.float32),
                        reference_forward(xb, w1, b1, w2, b2),
                        atol=2e-2, rtol=2e-2)

    # --- 4) small-batch jnp fast path ---------------------------------------
    xs = x[:64]
    out_s = jax.block_until_ready(net_forward(xs, w1, b1, w2, b2))
    assert out_s.shape == (64, 1)
    assert jnp.allclose(out_s, ref[:64], atol=1e-5, rtol=1e-5)

    print("KERNEL_OK")
</pallas_src>

<mosaic_0001>
module attributes {stable_mosaic.version = 11 : i64} {
  func.func @net_kernel(%arg0: i32, %arg1: memref<2xf32, #tpu.memory_space<smem>>, %arg2: memref<8x128xf32, #tpu.memory_space<vmem>>, %arg3: memref<8x128xf32, #tpu.memory_space<vmem>>) attributes {dimension_semantics = [#tpu.dimension_semantics<parallel>], iteration_bounds = array<i64: 1>, scalar_prefetch = 0 : i64, scratch_operands = 0 : i64, tpu.core_type = #tpu.core_type<tc>, window_params = [{transform_indices = @transform_0, window_bounds = array<i64: 2>}, {transform_indices = @transform_1, window_bounds = array<i64: 8, 128>}, {transform_indices = @transform_2, window_bounds = array<i64: 8, 128>}]} {
    %c0 = arith.constant 0 : index
    %0 = memref.load %arg1[%c0] : memref<2xf32, #tpu.memory_space<smem>>
    %c1 = arith.constant 1 : index
    %1 = memref.load %arg1[%c1] : memref<2xf32, #tpu.memory_space<smem>>
    %c0_0 = arith.constant 0 : index
    %c0_1 = arith.constant 0 : index
    %2 = vector.load %arg2[%c0_0, %c0_1] : memref<8x128xf32, #tpu.memory_space<vmem>>, vector<8x128xf32>
    %3 = vector.broadcast %0 : f32 to vector<8x128xf32>
    %4 = arith.mulf %2, %3 : vector<8x128xf32>
    %5 = vector.broadcast %1 : f32 to vector<8x128xf32>
    %6 = arith.addf %4, %5 : vector<8x128xf32>
    %7 = arith.negf %6 : vector<8x128xf32>
    %8 = math.exp %7 : vector<8x128xf32>
    %cst = arith.constant 1.000000e+00 : f32
    %9 = vector.broadcast %cst : f32 to vector<8x128xf32>
    %10 = arith.addf %9, %8 : vector<8x128xf32>
    %11 = arith.divf %9, %10 : vector<8x128xf32>
    %c0_2 = arith.constant 0 : index
    %c0_3 = arith.constant 0 : index
    %12 = vector.load %arg3[%c0_2, %c0_3] : memref<8x128xf32, #tpu.memory_space<vmem>>, vector<8x128xf32>
    tpu.vector_store %arg3[%c0_2, %c0_3], %11 {strides = array<i32>} : memref<8x128xf32, #tpu.memory_space<vmem>>, vector<8x128xf32>,
    return
  }
  func.func @transform_0(%arg0: i32) -> i32 {
    %c0_i32 = arith.constant 0 : i32
    %c0_i32_0 = arith.constant 0 : i32
    return %c0_i32 : i32
  }
  func.func @transform_1(%arg0: i32) -> (i32, i32) {
    %c0_i32 = arith.constant 0 : i32
    %c0_i32_0 = arith.constant 0 : i32
    return %arg0, %c0_i32 : i32, i32
  }
  func.func @transform_2(%arg0: i32) -> (i32, i32) {
    %c0_i32 = arith.constant 0 : i32
    %c0_i32_0 = arith.constant 0 : i32
    return %arg0, %c0_i32 : i32, i32
  }
}

</mosaic_0001>

<bundles_post_ra>
// kernel: tpu_custom_call.1
= control target key start
LH: loop header
LB: loop body
LE: loop exit
PB: predicated region body
PF: predicated region fallthrough
CT: control target
= control target key end

     0   :  { %7 = vsyncpa [#allocation5], 0  ;;  %s188_s0 = inlined_call_operand.hbm [shape: f32[2], index: 0, kind: input, shape index: {}]   ;;  %s189_s1 = inlined_call_operand.hbm [shape: f32[8,128], index: 1, kind: input, shape index: {}]   ;;  %s190_s2 = inlined_call_operand.hbm [shape: f32[8,128], index: 2, kind: output, shape index: {}]  }
   0x1   :  { %8 = vsyncpa [#allocation3], 0 }
   0x2   :  { %9 = vsyncpa [#allocation4], 0  ;;  %s74_s11 = scalar_lea.hbm %s188_s0, 16 }
   0x3   :  { %p75_p0 = scmp.ne.s32.totalorder %s188_s0, %s74_s11  ;;  %p78_p1 = scmp.lt.u32.totalorder %s74_s11, %s188_s0 }
   0x5   :  { %p80_p2 = pnand %p78_p1, %p75_p0 }
   0x7   :  { %83 = shalt.err (!%p80_p2)
}
   0x8   :  { %s134_s16 = smov [#allocation2]   ;;  %s135_s19 = smov [#allocation6]  }
   0x9   :  { %17 = dma.hbm_to_smem %s188_s0, 16, %s134_s16, [#allocation5]  }
   0xa   :  { %s24_s20 = sshll.u32 %s135_s19, 4  ;;  %s84_s23 = scalar_lea.hbm %s189_s1, 128  ;;  %s25_s20 = int_to_ptr.vmem [resolvable:$true] %s24_s20 }
   0xb   :  { %p85_p3 = scmp.ne.s32.totalorder %s189_s1, %s84_s23  ;;  %p88_p4 = scmp.lt.u32.totalorder %s84_s23, %s189_s1 }
   0xd   :  { %p90_p5 = pnand %p88_p4, %p85_p3 }
   0xf   :  { %93 = shalt.err (!%p90_p5)
}
  0x10   :  { %s94_s28 = scalar_lea.vmem %s25_s20, 128  ;;  %p99_p7 = scmp.lt.s32.totalorder %s25_s20, %s25_s20 }
  0x11   :  { %p95_p6 = scmp.ne.s32.totalorder %s25_s20, %s94_s28  ;;  %p100_p8 = scmp.lt.s32.totalorder %s94_s28, %s94_s28 }
  0x13   :  { %p101_p9 = por %p100_p8, %p99_p7 }
  0x15   :  { %p102_p10 = pnand %p101_p9, %p95_p6 }
  0x17   :  { %105 = shalt.err (!%p102_p10)
}
  0x18   :  { %27 = dma.hbm_to_vmem [thread:$0]  %s189_s1, 128, %s25_s20, [#allocation3]  }
  0x19   :  { %128 = dma.done.wait [#allocation5], 16  }
  0x1a   :  { %129 = vsyncadd [#allocation5], 4294967280 }
  0x1b   :  { %130 = dma.done.wait [#allocation3], 128  }
  0x1c   :  { %131 = vsyncadd [#allocation3], 4294967168 }
  0x1d   :  { %34 = sfence }
  0x1e   :  { %s35_s30 = sld [smem:[#allocation2]]  ;;  %s65_s3 = sld [smem:[#allocation2 + $0x1]]  ;;  %v37_v0 = vld [vmem:[#allocation6] sm:$0xff] }
  0x1f   :  { %s136_s4 = smov [#allocation7]  }
  0x20   :  { %s55_s5 = sshll.u32 %s136_s4, 4  ;;  %s56_s5 = int_to_ptr.vmem [resolvable:$true] %s55_s5 }
  0x21   :  { %s106_s1 = scalar_lea.vmem %s56_s5, 128  ;;  %p111_p12 = scmp.lt.s32.totalorder %s56_s5, %s56_s5 }
  0x22   :  { %p107_p11 = scmp.ne.s32.totalorder %s56_s5, %s106_s1  ;;  %p112_p13 = scmp.lt.s32.totalorder %s106_s1, %s106_s1 }
  0x24   :  { %v38_v1 = vstv %s35_s30  ;;  %v40_v2 = vstv %s65_s3  ;;  %p113_p0 = por %p112_p13, %p111_p12 }
  0x25   :  { %v39_v3 = vmul.f32 %v38_v1, %v37_v0 }
  0x26   :  { %p114_p1 = pnand %p113_p0, %p107_p11 }
  0x27   :  { %v41_v4 = vadd.f32 %v40_v2, %v39_v3 }
  0x29   :  { %v66_v5 = vmul.f32 -1.442695, %v41_v4 }
  0x2b   :  { %70 = vpow2.f32 %v66_v5 }
  0x35   :  { %v71_v6 = vpop.eup %70 }
  0x36   :  { %v45_v7 = vadd.f32 1.0, %v71_v6 }
  0x38   :  { %72 = vrcp.f32 %v45_v7 }
  0x42   :  { %v73_v8 = vpop.eup %72 }
  0x43   :  { %48 = vst [vmem:[#allocation7] sm:$0xff] %v73_v8 }
  0x44   :  { %117 = shalt.err (!%p114_p1)
}
  0x45   :  { %s118_s8 = scalar_lea.hbm %s190_s2, 128 }
  0x46   :  { %p119_p2 = scmp.ne.s32.totalorder %s190_s2, %s118_s8  ;;  %p122_p3 = scmp.lt.u32.totalorder %s118_s8, %s190_s2 }
  0x48   :  { %p124_p4 = pnand %p122_p3, %p119_p2 }
  0x4a   :  { %127 = shalt.err (!%p124_p4)
}
  0x4b   :  { %58 = dma.vmem_to_hbm [thread:$0]  %s56_s5, 128, %s190_s2, [#allocation4]  }
  0x4c   :  { %132 = dma.done.wait [#allocation4], 128  }
  0x4d   :  { %133 = vsyncadd [#allocation4], 4294967168 }
  0x4e   :  { %62 = vsyncpa [#allocation3], 1 }
  0x4f   :  { %63 = vsyncpa [#allocation4], 1 }
  0x50   :  { %64 = vsyncpa [#allocation5], 1 }

</bundles_post_ra>
